<compile_context>
chip_gen: v5e
topology: v5e:2x2
jax: 0.10.0
libtpu: 0.0.40
codegen_flags: <defaults>
</compile_context>

<pallas_src>
import functools
import math

import jax
import jax.numpy as jnp
from jax.experimental import pallas as pl
from jax.experimental.pallas import tpu as pltpu


def _round_up(x: int, m: int) -> int:
    return ((x + m - 1) // m) * m


def _default_bf16_act() -> bool:
    """bf16 VPU/EUP exists on v6e/v7x; keep f32 activations on v5e and older."""
    try:
        kind = jax.devices()[0].device_kind.lower()
        return ("v6" in kind) or ("v7" in kind)
    except Exception:
        return False


def _time_emb_kernel(t_ref, freq_ref, phase_ref, w1_ref, b1_ref, w2_ref, b2_ref,
                     o_ref, *, bf16_act: bool):
    # t_ref: [Bt, 1] f32 ; freq_ref / phase_ref: [1, in_ch] f32.
    t = t_ref[...]

    # [cos(a), sin(a)] along lanes == sin(t * [f, f] + [pi/2, 0]): one EUP pass,
    # no in-kernel concatenate / lane shuffle.
    emb = jnp.sin(t * freq_ref[...] + phase_ref[...])                    # [Bt, in_ch] f32

    # lin1: bf16 operands on the MXU, f32 accumulation, f32 bias add.
    h = jnp.dot(emb.astype(jnp.bfloat16), w1_ref[...],
                preferred_element_type=jnp.float32) + b1_ref[...]        # [Bt, C] f32

    # SiLU with a single transcendental: x * sigmoid(x) = x * (0.5*tanh(0.5*x) + 0.5).
    if bf16_act:
        # v6e/v7x: bf16 VPU/EUP -> half the vreg passes over the widest tensor;
        # h is cast to bf16 for the second matmul anyway.
        hb = h.astype(jnp.bfloat16)
        hb = hb * (jnp.tanh(hb * 0.5) * 0.5 + 0.5)
        out = jnp.dot(hb, w2_ref[...],
                      preferred_element_type=jnp.float32) + b2_ref[...]  # [Bt, C] f32
    else:
        # v5e-safe f32 activation path.
        h = h * (jnp.tanh(h * 0.5) * 0.5 + 0.5)
        out = jnp.dot(h.astype(jnp.bfloat16), w2_ref[...],
                      preferred_element_type=jnp.float32) + b2_ref[...]  # [Bt, C] f32

    o_ref[...] = out.astype(o_ref.dtype)


def prepare_time_embedding_params(frequencies, w1, b1, w2, b2):
    """One-time constant prep (call at init, NOT per diffusion step).

    w1: [in_ch, C], w2: [C, C] (transposed vs. PyTorch's [out, in]); b1, b2: [C].
    Returns kernel-ready operands: duplicated frequencies + phase vector for the
    cos/sin-as-single-sin trick, bf16 weights, 2-D f32 biases.
    """
    half = frequencies.shape[0]
    in_ch, C = w1.shape
    assert in_ch == 2 * half and w2.shape == (C, C)

    freq_full = jnp.concatenate([frequencies, frequencies]).astype(jnp.float32).reshape(1, in_ch)
    # Phase trick: cos(x) == sin(x + pi/2); cos block first, then sin (PyTorch concat order).
    phase = jnp.concatenate(
        [jnp.full((half,), jnp.pi / 2, jnp.float32), jnp.zeros((half,), jnp.float32)]
    ).reshape(1, in_ch)

    return dict(
        freq_full=freq_full,
        phase=phase,
        w1=w1.astype(jnp.bfloat16),
        b1=b1.astype(jnp.float32).reshape(1, C),
        w2=w2.astype(jnp.bfloat16),
        b2=b2.astype(jnp.float32).reshape(1, C),
    )


def sinusoidal_time_embedding(t, params, *, block_b=512, bf16_act=None,
                              out_dtype=jnp.float32):
    """t: [B] float -> [B, n_channels] in out_dtype, using prepared params."""
    if bf16_act is None:
        bf16_act = _default_bf16_act()

    freq_full, phase = params["freq_full"], params["phase"]
    w1, b1, w2, b2 = params["w1"], params["b1"], params["w2"], params["b2"]
    in_ch, C = w1.shape
    B = t.shape[0]

    # Batch tile: multiple of 8 sublanes.  For large B, cap the tile at half the
    # (8-rounded) batch (floor 128) so the "parallel" grid axis has >=2 steps and
    # both v7x TensorCores get work; tiny B stays a single minimal-size step.
    b8 = _round_up(max(B, 1), 8)
    bt = min(block_b, b8, max(128, _round_up(pl.cdiv(b8, 2), 8)))
    b_pad = _round_up(b8, bt)
    t2 = jnp.zeros((b_pad, 1), jnp.float32).at[:B, 0].set(t.astype(jnp.float32))

    const = lambda i: (0, 0)

    cost = pl.CostEstimate(
        flops=2 * b_pad * (in_ch * C + C * C),
        transcendentals=b_pad * (in_ch + C),
        bytes_accessed=(w1.size + w2.size) * 2
        + (b1.size + b2.size + freq_full.size + phase.size) * 4
        + b_pad * 4 + b_pad * C * jnp.dtype(out_dtype).itemsize,
    )

    out = pl.pallas_call(
        functools.partial(_time_emb_kernel, bf16_act=bf16_act),
        out_shape=jax.ShapeDtypeStruct((b_pad, C), out_dtype),
        grid_spec=pltpu.PrefetchScalarGridSpec(
            num_scalar_prefetch=0,
            grid=(b_pad // bt,),
            in_specs=[
                pl.BlockSpec((bt, 1), lambda i: (i, 0)),   # t         (tiled over B)
                pl.BlockSpec((1, in_ch), const),           # freq_full (VMEM-resident)
                pl.BlockSpec((1, in_ch), const),           # phase     (VMEM-resident)
                pl.BlockSpec((in_ch, C), const),           # w1 (bf16, resident)
                pl.BlockSpec((1, C), const),               # b1
                pl.BlockSpec((C, C), const),               # w2 (bf16, resident)
                pl.BlockSpec((1, C), const),               # b2
            ],
            out_specs=pl.BlockSpec((bt, C), lambda i: (i, 0)),
        ),
        compiler_params=pltpu.CompilerParams(
            dimension_semantics=("parallel",)),            # batch across v7x TCs
        cost_estimate=cost,
    )(t2, freq_full, phase, w1, b1, w2, b2)

    return out[:B]


def make_params(n_channels: int, max_period: int = 10000, seed: int = 0):
    input_channels = n_channels // 4
    half = input_channels // 2

    frequencies = jnp.exp(
        -math.log(max_period) * jnp.arange(0, half, dtype=jnp.float32) / half
    )

    key = jax.random.PRNGKey(seed)
    k1, k2, k3, k4 = jax.random.split(key, 4)

    # Deterministic init mimicking nn.Linear (uniform +/- 1/sqrt(fan_in)).
    bound1 = 1.0 / math.sqrt(input_channels)
    w1 = jax.random.uniform(k1, (input_channels, n_channels), jnp.float32, -bound1, bound1)
    b1 = jax.random.uniform(k2, (n_channels,), jnp.float32, -bound1, bound1)

    bound2 = 1.0 / math.sqrt(n_channels)
    w2 = jax.random.uniform(k3, (n_channels, n_channels), jnp.float32, -bound2, bound2)
    b2 = jax.random.uniform(k4, (n_channels,), jnp.float32, -bound2, bound2)

    return frequencies, w1, b1, w2, b2


def reference(t, frequencies, w1, b1, w2, b2):
    """Full-f32 reference matching the PyTorch module (cos first, then sin)."""
    args = t.astype(jnp.float32)[:, None] * frequencies[None, :]
    emb = jnp.concatenate([jnp.cos(args), jnp.sin(args)], axis=-1)
    h = emb @ w1 + b1
    h = h * jax.nn.sigmoid(h)
    return h @ w2 + b2


if __name__ == "__main__":
    n_channels = 128   # -> input_channels = 32, half = 16
    batch = 8

    frequencies, w1, b1, w2, b2 = make_params(n_channels, max_period=10000, seed=0)

    # Init-time constant prep: done once, reused for every diffusion step.
    params = prepare_time_embedding_params(frequencies, w1, b1, w2, b2)
    bf16_act = _default_bf16_act()

    t = jax.random.uniform(jax.random.PRNGKey(0), (batch,), jnp.float32, 0.0, 1000.0)

    emb_fn = jax.jit(functools.partial(sinusoidal_time_embedding, bf16_act=bf16_act))
    out = jax.block_until_ready(emb_fn(t, params))

    ref = reference(t, frequencies, w1, b1, w2, b2)
    assert out.shape == (batch, n_channels)
    # Tolerance covers bf16 MXU operands (and bf16 SiLU on v6e/v7x).
    tol = 3e-2 if bf16_act else 2e-2
    assert jnp.allclose(out, ref, atol=tol, rtol=tol), (
        f"max abs err = {jnp.max(jnp.abs(out - ref))}"
    )

    print("KERNEL_OK")
</pallas_src>

<mosaic_0001>
module attributes {stable_mosaic.version = 11 : i64} {
  func.func @_time_emb_kernel(%arg0: i32, %arg1: memref<8x1xf32, #tpu.memory_space<vmem>>, %arg2: memref<1x32xf32, #tpu.memory_space<vmem>>, %arg3: memref<1x32xf32, #tpu.memory_space<vmem>>, %arg4: memref<32x128xbf16, #tpu.memory_space<vmem>>, %arg5: memref<1x128xf32, #tpu.memory_space<vmem>>, %arg6: memref<128x128xbf16, #tpu.memory_space<vmem>>, %arg7: memref<1x128xf32, #tpu.memory_space<vmem>>, %arg8: memref<8x128xf32, #tpu.memory_space<vmem>>) attributes {dimension_semantics = [#tpu.dimension_semantics<parallel>], iteration_bounds = array<i64: 1>, scalar_prefetch = 0 : i64, scratch_operands = 0 : i64, tpu.core_type = #tpu.core_type<tc>, window_params = [{transform_indices = @transform_0, window_bounds = array<i64: 8, 1>}, {pipeline_mode = #tpu.pipeline_mode<synchronous>, transform_indices = @transform_1, window_bounds = array<i64: 1, 32>}, {pipeline_mode = #tpu.pipeline_mode<synchronous>, transform_indices = @transform_2, window_bounds = array<i64: 1, 32>}, {pipeline_mode = #tpu.pipeline_mode<synchronous>, transform_indices = @transform_3, window_bounds = array<i64: 32, 128>}, {pipeline_mode = #tpu.pipeline_mode<synchronous>, transform_indices = @transform_4, window_bounds = array<i64: 1, 128>}, {pipeline_mode = #tpu.pipeline_mode<synchronous>, transform_indices = @transform_5, window_bounds = array<i64: 128, 128>}, {pipeline_mode = #tpu.pipeline_mode<synchronous>, transform_indices = @transform_6, window_bounds = array<i64: 1, 128>}, {transform_indices = @transform_7, window_bounds = array<i64: 8, 128>}]} {
    %c0 = arith.constant 0 : index
    %c0_0 = arith.constant 0 : index
    %0 = vector.load %arg1[%c0, %c0_0] : memref<8x1xf32, #tpu.memory_space<vmem>>, vector<8x1xf32>
    %c0_1 = arith.constant 0 : index
    %c0_2 = arith.constant 0 : index
    %1 = vector.load %arg2[%c0_1, %c0_2] : memref<1x32xf32, #tpu.memory_space<vmem>>, vector<1x32xf32>
    %2 = vector.broadcast %0 : vector<8x1xf32> to vector<8x32xf32>
    %3 = vector.broadcast %1 : vector<1x32xf32> to vector<8x32xf32>
    %4 = arith.mulf %2, %3 : vector<8x32xf32>
    %c0_3 = arith.constant 0 : index
    %c0_4 = arith.constant 0 : index
    %5 = vector.load %arg3[%c0_3, %c0_4] : memref<1x32xf32, #tpu.memory_space<vmem>>, vector<1x32xf32>
    %6 = vector.broadcast %5 : vector<1x32xf32> to vector<8x32xf32>
    %7 = arith.addf %4, %6 : vector<8x32xf32>
    %8 = math.sin %7 : vector<8x32xf32>
    %9 = arith.truncf %8 : vector<8x32xf32> to vector<8x32xbf16>
    %c0_5 = arith.constant 0 : index
    %c0_6 = arith.constant 0 : index
    %10 = vector.load %arg4[%c0_5, %c0_6] : memref<32x128xbf16, #tpu.memory_space<vmem>>, vector<32x128xbf16>
    %cst = arith.constant dense<0.000000e+00> : vector<8x128xf32>
    %11 = tpu.matmul %9, %10, %cst {dimension_numbers = #tpu.dot_dimension_numbers<[1], [0], [0], [1], [0, 0, 1, 1], [], []>} : vector<8x32xbf16>, vector<32x128xbf16>, vector<8x128xf32> -> vector<8x128xf32>
    %c0_7 = arith.constant 0 : index
    %c0_8 = arith.constant 0 : index
    %12 = vector.load %arg5[%c0_7, %c0_8] : memref<1x128xf32, #tpu.memory_space<vmem>>, vector<1x128xf32>
    %13 = vector.broadcast %12 : vector<1x128xf32> to vector<8x128xf32>
    %14 = arith.addf %11, %13 : vector<8x128xf32>
    %cst_9 = arith.constant 5.000000e-01 : f32
    %15 = vector.broadcast %cst_9 : f32 to vector<8x128xf32>
    %16 = arith.mulf %14, %15 : vector<8x128xf32>
    %17 = math.tanh %16 : vector<8x128xf32>
    %cst_10 = arith.constant 5.000000e-01 : f32
    %18 = vector.broadcast %cst_10 : f32 to vector<8x128xf32>
    %19 = arith.mulf %17, %18 : vector<8x128xf32>
    %cst_11 = arith.constant 5.000000e-01 : f32
    %20 = vector.broadcast %cst_11 : f32 to vector<8x128xf32>
    %21 = arith.addf %19, %20 : vector<8x128xf32>
    %22 = arith.mulf %14, %21 : vector<8x128xf32>
    %23 = arith.truncf %22 : vector<8x128xf32> to vector<8x128xbf16>
    %c0_12 = arith.constant 0 : index
    %c0_13 = arith.constant 0 : index
    %24 = vector.load %arg6[%c0_12, %c0_13] : memref<128x128xbf16, #tpu.memory_space<vmem>>, vector<128x128xbf16>
    %cst_14 = arith.constant dense<0.000000e+00> : vector<8x128xf32>
    %25 = tpu.matmul %23, %24, %cst_14 {dimension_numbers = #tpu.dot_dimension_numbers<[1], [0], [0], [1], [0, 0, 1, 1], [], []>} : vector<8x128xbf16>, vector<128x128xbf16>, vector<8x128xf32> -> vector<8x128xf32>
    %c0_15 = arith.constant 0 : index
    %c0_16 = arith.constant 0 : index
    %26 = vector.load %arg7[%c0_15, %c0_16] : memref<1x128xf32, #tpu.memory_space<vmem>>, vector<1x128xf32>
    %27 = vector.broadcast %26 : vector<1x128xf32> to vector<8x128xf32>
    %28 = arith.addf %25, %27 : vector<8x128xf32>
    %c0_17 = arith.constant 0 : index
    %c0_18 = arith.constant 0 : index
    %29 = vector.load %arg8[%c0_17, %c0_18] : memref<8x128xf32, #tpu.memory_space<vmem>>, vector<8x128xf32>
    tpu.vector_store %arg8[%c0_17, %c0_18], %28 {strides = array<i32>} : memref<8x128xf32, #tpu.memory_space<vmem>>, vector<8x128xf32>,
    return
  }
  func.func @transform_0(%arg0: i32) -> (i32, i32) {
    %c0_i32 = arith.constant 0 : i32
    %c0_i32_0 = arith.constant 0 : i32
    return %arg0, %c0_i32 : i32, i32
  }
  func.func @transform_1(%arg0: i32) -> (i32, i32) {
    %c0_i32 = arith.constant 0 : i32
    %c0_i32_0 = arith.constant 0 : i32
    %c0_i32_1 = arith.constant 0 : i32
    return %c0_i32, %c0_i32_0 : i32, i32
  }
  func.func @transform_2(%arg0: i32) -> (i32, i32) {
    %c0_i32 = arith.constant 0 : i32
    %c0_i32_0 = arith.constant 0 : i32
    %c0_i32_1 = arith.constant 0 : i32
    return %c0_i32, %c0_i32_0 : i32, i32
  }
  func.func @transform_3(%arg0: i32) -> (i32, i32) {
    %c0_i32 = arith.constant 0 : i32
    %c0_i32_0 = arith.constant 0 : i32
    %c0_i32_1 = arith.constant 0 : i32
    return %c0_i32, %c0_i32_0 : i32, i32
  }
  func.func @transform_4(%arg0: i32) -> (i32, i32) {
    %c0_i32 = arith.constant 0 : i32
    %c0_i32_0 = arith.constant 0 : i32
    %c0_i32_1 = arith.constant 0 : i32
    return %c0_i32, %c0_i32_0 : i32, i32
  }
  func.func @transform_5(%arg0: i32) -> (i32, i32) {
    %c0_i32 = arith.constant 0 : i32
    %c0_i32_0 = arith.constant 0 : i32
    %c0_i32_1 = arith.constant 0 : i32
    return %c0_i32, %c0_i32_0 : i32, i32
  }
  func.func @transform_6(%arg0: i32) -> (i32, i32) {
    %c0_i32 = arith.constant 0 : i32
    %c0_i32_0 = arith.constant 0 : i32
    %c0_i32_1 = arith.constant 0 : i32
    return %c0_i32, %c0_i32_0 : i32, i32
  }
  func.func @transform_7(%arg0: i32) -> (i32, i32) {
    %c0_i32 = arith.constant 0 : i32
    %c0_i32_0 = arith.constant 0 : i32
    return %arg0, %c0_i32 : i32, i32
  }
}

</mosaic_0001>

<bundles_post_ra>
// kernel: sinusoidal_time_embedding.1
= control target key start
LH: loop header
LB: loop body
LE: loop exit
PB: predicated region body
PF: predicated region fallthrough
CT: control target
= control target key end

     0   :  { %12 = vsyncpa [#allocation3], 0  ;;  %s671_s0 = inlined_call_operand.vmem [shape: f32[8,1], index: 0, kind: input, shape index: {}]   ;;  %s672_s1 = inlined_call_operand.vmem [shape: f32[1,32], index: 1, kind: input, shape index: {}]   ;;  %s673_s2 = inlined_call_operand.vmem [shape: f32[1,32], index: 2, kind: input, shape index: {}]   ;;  %s674_s3 = inlined_call_operand.hbm [shape: bf16[32,128], index: 3, kind: input, shape index: {}]   ;;  %s675_s4 = inlined_call_operand.vmem [shape: f32[1,128], index: 4, kind: input, shape index: {}]   ;;  %s676_s5 = inlined_call_operand.hbm [shape: bf16[128,128], index: 5, kind: input, shape index: {}]   ;;  %s677_s6 = inlined_call_operand.vmem [shape: f32[1,128], index: 6, kind: input, shape index: {}]   ;;  %s678_s7 = inlined_call_operand.hbm [shape: f32[8,128], index: 7, kind: output, shape index: {}]  }
   0x1   :  { %13 = vsyncpa [#allocation6], 0 }
   0x2   :  { %14 = vsyncpa [#allocation4], 0  ;;  %s25_s26 = sshll.u32 %s674_s3, 4  ;;  %s526_s27 = smov [#allocation2]   ;;  %s26_s26 = int_to_ptr.hbm [resolvable:$true] %s25_s26 }
   0x3   :  { %s27_s28 = sshll.u32 %s526_s27, 4  ;;  %s40_s8 = sshll.u32 %s676_s5, 4  ;;  %s28_s28 = int_to_ptr.vmem [resolvable:$true] %s27_s28  ;;  %s41_s8 = int_to_ptr.hbm [resolvable:$true] %s40_s8 }
   0x4   :  { %s527_s9 = smov 64   ;;  %s528_s10 = smov 4  }
   0x5   :  { %33 = dma.hbm_to_vmem [thread:$0]  %s26_s26, 256, %s28_s28, [#allocation3], %s527_s9, %s527_s9, %s528_s10  }
   0x6   :  { %s529_s11 = smov [#allocation5]  }
   0x7   :  { %s42_s12 = sshll.u32 %s529_s11, 4  ;;  %s43_s12 = int_to_ptr.vmem [resolvable:$true] %s42_s12 }
   0x8   :  { %48 = dma.hbm_to_vmem [thread:$0]  %s41_s8, 1024, %s43_s12, [#allocation6], %s527_s9, %s527_s9, %s528_s10  }
   0x9   :  { %520 = dma.done.wait [#allocation3], 256  }
   0xa   :  { %521 = vsyncadd [#allocation3], 4294967040 }
   0xb   :  { %522 = dma.done.wait [#allocation6], 1024  }
   0xc   :  { %523 = vsyncadd [#allocation6], 4294966272  ;;  %v530_v0 = vmov 0   ;;  %v60_v1 = vld [vmem:[%s671_s0] sm:$0xff]  ;;  %v420_v6 = vld [vmem:[#allocation2 + $0x8] sm:$0xff]  ;;  %s537_s18 = smov [#allocation7]  }
   0xd   :  { %441 = vset.pattern.permute.xlu0 %v530_v0  ;;  %v442_v2 = vld [vmem:[%s672_s1] ss:$0 sm:$0xff]  ;;  %262 = vmatpush.bf16.msra.mxu0 %v420_v6  ;;  %v531_v20 = vmov 683565275   ;;  %v532_v22 = vmov 2475754826  }
   0xe   :  { %64 = vperm.xlu0 %441, %v60_v1   ;;  %v443_v3 = vld [vmem:[%s673_s2] ss:$0 sm:$0xff]  ;;  %v533_v25 = vmov 2131351028   ;;  %v534_v28 = vmov 2102212464  }
   0xf   :  { %v419_v8 = vld [vmem:[#allocation2] sm:$0xff]  ;;  %v535_v31 = vmov 920167782   ;;  %v536_v34 = vmov 1326507024   ;;  %s362_s19 = sshll.u32 %s537_s18, 4  ;;  %s363_s19 = int_to_ptr.vmem [resolvable:$true] %s362_s19 }
  0x11   :  { %263 = vmatpush.bf16.msra.mxu0 %v419_v8 }
  0x80   :  { %v65_v4 = vpop.permute.xlu0 %64 }
  0x81   :  { %v70_v5 = vmul.f32 %v442_v2, %v65_v4 }
  0x83   :  { %v594_v7 = vadd.f32 %v443_v3, %v70_v5 }
  0x85   :  { %v79_v9 = vand.u32 2139095040, %v594_v7  ;;  %v76_v12 = vand.u32 2147483647, %v594_v7  ;;  %vm78_vm12 = vcmp.lt.s32.totalorder %v594_v7, 0 }
  0x87   :  { %v80_v10 = vshrl.u32 %v79_v9, 23  ;;  %v83_v14 = vand.u32 8388607, %v76_v12  ;;  %vm652_vm13 = vcmp.le.f32.partialorder %v76_v12, 0.7853982 }
  0x89   :  { %v375_v11 = vadd.s32 4294967169, %v80_v10  ;;  %v84_v18 = vor.u32 8388608, %v83_v14 }
  0x8b   :  { %v86_v13 = vadd.s32 1, %v375_v11  ;;  %v611_v41 = vshll.u32 %v84_v18, 8 }
  0x8d   :  { %vm87_vm0 = vcmp.gt.s32.totalorder %v86_v13, 0  ;;  %v125_v50 = vand.u32 65535, %v611_v41  ;;  %v126_v55 = vshrl.u32 %v611_v41, 16 }
  0x8e   :  { %v88_v15 = vsel %vm87_vm0, %v86_v13, 0 }
  0x8f   :  { %v90_v16 = vand.u32 31, %v88_v15  ;;  %v602_v19 = vshrl.u32 %v88_v15, 5 }
  0x91   :  { %v600_v17 = vsub.s32 32, %v90_v16  ;;  %v93_v21 = vshll.u32 %v531_v20, %v90_v16  ;;  %v96_v23 = vshll.u32 %v532_v22, %v90_v16  ;;  %v99_v27 = vshll.u32 %v533_v25, %v90_v16 }
  0x92   :  { %v102_v30 = vshll.u32 %v534_v28, %v90_v16  ;;  %v105_v33 = vshll.u32 %v535_v31, %v90_v16  ;;  %vm108_vm1 = vcmp.lt.s32.totalorder %v602_v19, 1  ;;  %vm111_vm2 = vcmp.lt.s32.totalorder %v602_v19, 4 }
  0x93   :  { %v94_v24 = vshrl.u32 %v532_v22, %v600_v17  ;;  %v97_v26 = vshrl.u32 %v533_v25, %v600_v17  ;;  %v100_v29 = vshrl.u32 %v534_v28, %v600_v17  ;;  %v103_v32 = vshrl.u32 %v535_v31, %v600_v17 }
  0x94   :  { %v106_v35 = vshrl.u32 %v536_v34, %v600_v17  ;;  %vm110_vm3 = vcmp.lt.s32.totalorder %v602_v19, 3  ;;  %vm109_vm4 = vcmp.lt.s32.totalorder %v602_v19, 2  ;;  %v92_v14 = vshrl.u32 %v531_v20, %v600_v17 }
  0x95   :  { %v95_v36 = vor.u32 %v94_v24, %v93_v21  ;;  %v98_v37 = vor.u32 %v97_v26, %v96_v23  ;;  %v101_v38 = vor.u32 %v100_v29, %v99_v27  ;;  %v104_v39 = vor.u32 %v103_v32, %v102_v30 }
  0x96   :  { %v107_v40 = vor.u32 %v106_v35, %v105_v33 }
  0x97   :  { %v116_v42 = vsel %vm108_vm1, %v95_v36, %v98_v37  ;;  %v120_v43 = vsel %vm108_vm1, %v98_v37, %v101_v38  ;;  %v117_v44 = vsel %vm111_vm2, %v104_v39, 920167782  ;;  %v113_v8 = vsel %vm111_vm2, %v101_v38, 2102212464 }
  0x98   :  { %v121_v45 = vsel %vm111_vm2, %v107_v40, 1326507024  ;;  %v118_v46 = vsel %vm110_vm3, %v101_v38, %v117_v44  ;;  %v112_v24 = vsel %vm108_vm1, %v92_v14, %v95_v36  ;;  %v114_v25 = vsel %vm110_vm3, %v98_v37, %v113_v8 }
  0x99   :  { %v122_v47 = vsel %vm110_vm3, %v104_v39, %v121_v45  ;;  %v119_v48 = vsel %vm109_vm4, %v116_v42, %v118_v46  ;;  %v115_v17 = vsel %vm109_vm4, %v112_v24, %v114_v25  ;;  %vm219_vm1 = vweird.f32 %v594_v7 }
  0x9a   :  { %v123_v49 = vsel %vm109_vm4, %v120_v43, %v122_v47  ;;  %v149_v53 = vand.u32 65535, %v119_v48  ;;  %v150_v54 = vshrl.u32 %v119_v48, 16  ;;  %v169_v32 = vmul.u32 %v611_v41, %v115_v17  ;;  %v424_v17 = vld [vmem:[#allocation5 + $0x18] sm:$0xff] }
  0x9b   :  { %v127_v51 = vand.u32 65535, %v123_v49  ;;  %v128_v52 = vshrl.u32 %v123_v49, 16  ;;  %vm252_vm2 = vcmask 261120  }
  0x9c   :  { %v152_v57 = vmul.u32 %v150_v54, %v125_v50  ;;  %v153_v59 = vmul.u32 %v149_v53, %v126_v55  ;;  %v151_v62 = vmul.u32 %v149_v53, %v125_v50  ;;  %v154_v2 = vmul.u32 %v150_v54, %v126_v55 }
  0x9d   :  { %v130_v56 = vmul.u32 %v128_v52, %v125_v50  ;;  %v131_v58 = vmul.u32 %v127_v51, %v126_v55  ;;  %v129_v60 = vmul.u32 %v127_v51, %v125_v50  ;;  %v132_v1 = vmul.u32 %v128_v52, %v126_v55  ;;  %v428_v52 = vld [vmem:[#allocation5 + $0x38] sm:$0xff]  ;;  %v427_v55 = vld [vmem:[#allocation5 + $0x30] sm:$0xff] }
  0x9e   :  { %v155_v63 = vshll.u32 %v152_v57, 16  ;;  %v157_v4 = vshll.u32 %v153_v59, 16  ;;  %v156_v22 = vshrl.u32 %v152_v57, 16  ;;  %v158_v28 = vshrl.u32 %v153_v59, 16  ;;  %343 = vmatpush.bf16.msra.mxu1 %v428_v52 }
  0x9f   :  { %v133_v61 = vshll.u32 %v130_v56, 16  ;;  %v135_v3 = vshll.u32 %v131_v58, 16  ;;  %v134_v18 = vshrl.u32 %v130_v56, 16  ;;  %v136_v26 = vshrl.u32 %v131_v58, 16  ;;  %v426_v58 = vld [vmem:[#allocation5 + $0x28] sm:$0xff] }
  0xa0   :  { %vm159_vm6 = vc.u32 %v151_v62, %v155_v63  ;;  %v161_v6 = vadd.s32 %v155_v63, %v151_v62 }
  0xa1   :  { %vm137_vm5 = vc.u32 %v129_v60, %v133_v61  ;;  %v139_v5 = vadd.s32 %v133_v61, %v129_v60  ;;  %v160_v10 = vsel %vm159_vm6, 1, %v530_v0 }
  0xa2   :  { %v138_v9 = vsel %vm137_vm5, 1, %v530_v0  ;;  %v162_v13 = vadd.s32 %v160_v10, %v154_v2  ;;  %vm163_vm8 = vc.u32 %v161_v6, %v157_v4  ;;  %v165_v30 = vadd.s32 %v161_v6, %v157_v4  ;;  %344 = vmatpush.bf16.msra.mxu1 %v427_v55 }
  0xa3   :  { %v140_v11 = vadd.s32 %v138_v9, %v132_v1  ;;  %vm141_vm7 = vc.u32 %v139_v5, %v135_v3  ;;  %v164_v16 = vsel %vm163_vm8, 1, %v530_v0 }
  0xa4   :  { %v142_v15 = vsel %vm141_vm7, 1, %v530_v0  ;;  %v166_v23 = vadd.s32 %v164_v16, %v162_v13 }
  0xa5   :  { %v144_v21 = vadd.s32 %v142_v15, %v140_v11 }
  0xa6   :  { %v167_v29 = vadd.s32 %v166_v23, %v156_v22  ;;  %345 = vmatpush.bf16.msra.mxu1 %v426_v58 }
  0xa7   :  { %v145_v27 = vadd.s32 %v144_v21, %v134_v18 }
  0xa8   :  { %v168_v0 = vadd.s32 %v167_v29, %v158_v28  ;;  %v425_v29 = vld [vmem:[#allocation5 + $0x20] sm:$0xff] }
  0xa9   :  { %v146_v20 = vadd.s32 %v145_v27, %v136_v26 }
  0xaa   :  { %v172_v31 = vadd.s32 1, %v168_v0  ;;  %346 = vmatpush.bf16.msra.mxu1 %v425_v29 }
  0xab   :  { %vm171_vm9 = vc.u32 %v146_v20, %v165_v30  ;;  %v170_v44 = vadd.s32 %v165_v30, %v146_v20  ;;  %v423_v20 = vld [vmem:[#allocation5 + $0x10] sm:$0xff]  ;;  %v422_v30 = vld [vmem:[#allocation5 + $0x8] sm:$0xff] }
  0xac   :  { %v173_v33 = vsel %vm171_vm9, %v172_v31, %v168_v0  ;;  %v421_v0 = vld [vmem:[#allocation5] sm:$0xff]  ;;  %v444_v31 = vld [vmem:[%s675_s4] ss:$0 sm:$0xff]  ;;  %s364_s4 = sshll.u32 %s678_s7, 4  ;;  %s365_s4 = int_to_ptr.hbm [resolvable:$true] %s364_s4 }
  0xad   :  { %v174_v34 = vadd.s32 %v173_v33, %v169_v32 }
  0xae   :  { %347 = vmatpush.bf16.msra.mxu1 %v424_v17 }
  0xaf   :  { %v175_v35 = vadd.s32 536870912, %v174_v34 }
  0xb1   :  { %v176_v36 = vshrl.u32 %v175_v35, 30 }
  0xb2   :  { %348 = vmatpush.bf16.msra.mxu1 %v423_v20 }
  0xb3   :  { %v177_v38 = vshll.u32 %v176_v36, 30  ;;  %v200_v61 = vsub.s32 4, %v176_v36 }
  0xb5   :  { %v178_v37 = vsub.s32 %v174_v34, %v177_v38  ;;  %v201_v3 = vsel %vm78_vm12, %v200_v61, %v176_v36 }
  0xb6   :  { %v203_v6 = vsel %vm652_vm13, 0, %v201_v3  ;;  %349 = vmatpush.bf16.msra.mxu1 %v422_v30 }
  0xb7   :  { %vm179_vm10 = vcmp.lt.s32.totalorder %v178_v37, 0  ;;  %v180_v39 = vsub.s32 0, %v178_v37  ;;  %v220_v11 = vadd.s32 3, %v203_v6 }
  0xb9   :  { %v181_v40 = vsel %vm179_vm10, %v180_v39, %v178_v37  ;;  %v221_v18 = vand.u32 3, %v220_v11 }
  0xba   :  { %v182_v42 = vclz %v181_v40  ;;  %350 = vmatpush.bf16.msra.mxu1 %v421_v0  ;;  %v445_v40 = vld [vmem:[%s677_s6] ss:$0 sm:$0xff] }
  0xbb   :  { %vm223_vm14 = vcmp.eq.s32.totalorder %v221_v18, 0  ;;  %vm226_vm15 = vcmp.eq.s32.totalorder %v221_v18, 2  ;;  %vm222_vm0 = vcmp.lt.s32.totalorder %v221_v18, 2 }
  0xbc   :  { %v376_v43 = vadd.s32 4294967294, %v182_v42 }
  0xbe   :  { %vm377_vm11 = vcmp.lt.s32.totalorder %v376_v43, 0 }
  0xbf   :  { %v185_v19 = vsel %vm377_vm11, 0, %v376_v43 }
  0xc0   :  { %v186_v45 = vsub.s32 32, %v185_v19  ;;  %v190_v46 = vsub.s32 4294967266, %v185_v19  ;;  %v187_v47 = vshll.u32 %v178_v37, %v185_v19 }
  0xc2   :  { %v188_v48 = vshrl.u32 %v170_v44, %v186_v45  ;;  %v191_v49 = vadd.s32 127, %v190_v46 }
  0xc4   :  { %v189_v41 = vor.u32 %v188_v48, %v187_v47  ;;  %v192_v50 = vshll.u32 %v191_v49, 23 }
  0xc6   :  { %v193_v51 = vor.u32 4788187, %v192_v50  ;;  %v196_v54 = vcvt.s32.f32 %v189_v41 }
  0xc8   :  { %v194_v53 = vand.u32 2147483647, %v193_v51 }
  0xca   :  { %v197_v56 = vmul.f32 %v196_v54, %v194_v53 }
  0xcc   :  { %v198_v57 = vxor.u32 2147483648, %v197_v56 }
  0xce   :  { %v199_v60 = vsel %vm78_vm12, %v198_v57, %v197_v56 }
  0xcf   :  { %v202_v62 = vsel %vm652_vm13, %v594_v7, %v199_v60 }
  0xd0   :  { %v204_v63 = vmul.f32 %v202_v62, %v202_v62 }
  0xd2   :  { %v205_v1 = vmul.f32 -0.001358992, %v204_v63  ;;  %v212_v2 = vmul.f32 -0.00019511016, %v204_v63 }
  0xd4   :  { %v206_v4 = vadd.f32 0.041655596, %v205_v1  ;;  %v213_v5 = vadd.f32 0.008332121, %v212_v2 }
  0xd6   :  { %v207_v12 = vmul.f32 %v206_v4, %v204_v63  ;;  %v214_v8 = vmul.f32 %v213_v5, %v204_v63 }
  0xd8   :  { %v208_v9 = vadd.f32 -0.4999988, %v207_v12  ;;  %v215_v10 = vadd.f32 -0.16666654, %v214_v8 }
  0xda   :  { %v209_v13 = vmul.f32 %v208_v9, %v204_v63  ;;  %v216_v14 = vmul.f32 %v215_v10, %v204_v63 }
  0xdc   :  { %v210_v15 = vadd.f32 1.0, %v209_v13  ;;  %v217_v16 = vadd.f32 1.0, %v216_v14 }
  0xde   :  { %v218_v21 = vmul.f32 %v217_v16, %v202_v62  ;;  %v227_v22 = vxor.u32 2147483648, %v210_v15 }
  0xe0   :  { %v224_v23 = vxor.u32 2147483648, %v218_v21  ;;  %v228_v25 = vsel %vm226_vm15, %v227_v22, %v218_v21 }
  0xe2   :  { %v225_v24 = vsel %vm223_vm14, %v210_v15, %v224_v23 }
  0xe3   :  { %v229_v26 = vsel %vm222_vm0, %v225_v24, %v228_v25 }
  0xe4   :  { %v230_v27 = vsel %vm219_vm1, nan, %v229_v26 }
  0xe5   :  { %v231_v28 = vpack.c.bf16 %v230_v27, %v230_v27 }
  0xe7   :  { %386 = vmatmul.msk.bf16.vlgmr.msra.gmra.mxu0 %vm252_vm2, %v231_v28 }
 0x164   :  { %v265_v7 = vpop.f32.mrf.mxu0 }
 0x165   :  { %v266_v32 = vadd.f32 %v444_v31, %v265_v7 }
 0x167   :  { %v269_v33 = vmul.f32 0.5, %v266_v32 }
 0x169   :  { %446 = vtanh.f32 %v269_v33 }
 0x16c   :  { %v267_v34 = vpop.f32.mrf.mxu0 }
 0x16f   :  { %v447_v35 = vpop.eup %446 }
 0x170   :  { %v271_v36 = vmul.f32 0.5, %v447_v35 }
 0x172   :  { %v272_v38 = vadd.f32 0.5, %v271_v36 }
 0x174   :  { %v273_v37 = vmul.f32 %v272_v38, %v266_v32 }
 0x176   :  { %v274_v39 = vpack.c.bf16 %v273_v37, %v273_v37 }
 0x178   :  { %351 = vmatmul.bf16.vlgmr.msra.gmra.mxu1 %v274_v39 }
 0x1f5   :  { %v352_v42 = vpop.f32.mrf.mxu1 }
 0x1f6   :  { %v353_v43 = vadd.f32 %v445_v40, %v352_v42 }
 0x1f8   :  { %356 = vst [vmem:[#allocation7] sm:$0xff] %v353_v43 }
 0x1f9   :  { %367 = dma.vmem_to_hbm [thread:$0]  %s363_s19, 128, %s365_s4, [#allocation4]  }
 0x1fd   :  { %v354_v19 = vpop.f32.mrf.mxu1 }
 0x1fe   :  { %524 = dma.done.wait [#allocation4], 128  }
 0x1ff   :  { %525 = vsyncadd [#allocation4], 4294967168 }
 0x200   :  { %372 = vsyncpa [#allocation3], 1 }
 0x201   :  { %373 = vsyncpa [#allocation6], 1 }
 0x202   :  { %374 = vsyncpa [#allocation4], 1 }

</bundles_post_ra>
